<compile_context>
chip_gen: v7x
topology: tpu7x:2x2x1
jax: 0.10.0
libtpu: 0.0.40
codegen_flags: <defaults>
</compile_context>

<pallas_src>
import jax
import jax.numpy as jnp
from jax.experimental import pallas as pl
from jax.experimental.pallas import tpu as pltpu

_NEG_INF = -1e30  # padded-vocab bias value (finite, avoids inf arithmetic)


def _decoder_kernel(tok_ref,        # SMEM (T,) int32 tokens (drives the embedding gather)
                    x_ref,          # (1, 1, H) bf16: gathered, ReLU'd embedding row for step t
                    h0_ref,         # (1, H) f32 initial hidden state
                    c0_ref,         # (1, H) f32 initial cell state
                    w_xh_ref,       # (2H, 4H) bf16: [W_ih^T ; W_hh^T], gate order (i,f,g,o)
                    b_ref,          # (1, 4H) f32: b_ih + b_hh
                    w_out_ref,      # (H, Vp) bf16: W_out^T, zero-padded to Vp lanes
                    b_out_ref,      # (1, Vp) f32: bias, padded lanes = -1e30
                    logp_ref,       # (1, 1, Vp) f32 out: log-probs for step t
                    h_out_ref,      # (1, H) f32 out: recurrent state, VMEM-resident across steps
                    c_out_ref):     # (1, H) f32 out: recurrent state, VMEM-resident across steps
    H = h0_ref.shape[1]
    t = pl.program_id(0)

    # Seed the resident recurrent state from h0/c0 at the first step only.
    @pl.when(t == 0)
    def _():
        h_out_ref[...] = h0_ref[...]
        c_out_ref[...] = c0_ref[...]

    x = x_ref[...].reshape(1, H)               # bf16; ReLU already applied to the table
    h = h_out_ref[...]                         # f32 state carried across grid steps
    c = c_out_ref[...]

    # Fused LSTM gates: two accumulated (1,H)@(H,4H) bf16 MXU passes, f32 accumulation.
    gates = (jnp.dot(x, w_xh_ref[:H, :], preferred_element_type=jnp.float32)
             + jnp.dot(h.astype(jnp.bfloat16), w_xh_ref[H:, :],
                       preferred_element_type=jnp.float32)
             + b_ref[...])                     # (1, 4H) f32

    # PyTorch gate order (i, f, g, o); H is a multiple of 128 so slices are lane-aligned.
    i_g = jax.nn.sigmoid(gates[:, 0 * H:1 * H])
    f_g = jax.nn.sigmoid(gates[:, 1 * H:2 * H])
    g_g = jnp.tanh(gates[:, 2 * H:3 * H])
    o_g = jax.nn.sigmoid(gates[:, 3 * H:4 * H])

    c_new = f_g * c + i_g * g_g
    h_new = o_g * jnp.tanh(c_new)

    # Output projection (lane-dense Vp) + log-softmax; padded lanes carry -1e30 bias so
    # they contribute ~0 to the normalization constant.
    logits = (jnp.dot(h_new.astype(jnp.bfloat16), w_out_ref[...],
                      preferred_element_type=jnp.float32)
              + b_out_ref[...])                # (1, Vp) f32
    m = jnp.max(logits, axis=1, keepdims=True)
    lse = m + jnp.log(jnp.sum(jnp.exp(logits - m), axis=1, keepdims=True))
    logp_ref[...] = (logits - lse).reshape(1, 1, -1).astype(logp_ref.dtype)

    h_out_ref[...] = h_new
    c_out_ref[...] = c_new


def simple_decoder_rnn_decode(tokens, hidden_state, cell_state, params):
    """Run T teacher-forced SimpleDecoderRNN.forward steps in ONE fused pallas_call.

    tokens:       (T,) int32 token indices
    hidden_state: (1, 1, H) float32
    cell_state:   (1, 1, H) float32
    returns (log_probs (T, V), hidden_state (1, 1, H), cell_state (1, 1, H)).
    """
    emb = params["embedding"]      # (V, 1, H) bf16, ReLU pre-applied
    w_xh = params["w_xh"]          # (2H, 4H) bf16
    b = params["lstm_bias"]        # (1, 4H) f32
    w_out = params["w_out"]        # (H, Vp) bf16
    b_out = params["b_out"]        # (1, Vp) f32

    V, _, H = emb.shape
    Vp = w_out.shape[1]
    tokens = jnp.asarray(tokens, jnp.int32).reshape((-1,))
    T = tokens.shape[0]

    # Clamp so the data-dependent embedding-row DMA can never be OOB.
    # (NOTE: out-of-range tokens silently map to V-1.)
    tok = jnp.clip(tokens, 0, V - 1)
    h_in = hidden_state.reshape(1, H).astype(jnp.float32)
    c_in = cell_state.reshape(1, H).astype(jnp.float32)

    grid_spec = pltpu.PrefetchScalarGridSpec(
        num_scalar_prefetch=1,
        grid=(T,),
        in_specs=[
            # Per-step single-row embedding gather (H*2 bytes/step HBM->VMEM),
            # double-buffered by the default pipeline.
            pl.BlockSpec((1, 1, H), lambda t, tok: (tok[t], 0, 0)),
            pl.BlockSpec((1, H), lambda t, tok: (0, 0)),             # h0
            pl.BlockSpec((1, H), lambda t, tok: (0, 0)),             # c0
            # Constant index maps -> weights DMA'd once, VMEM-resident for all T steps.
            pl.BlockSpec((2 * H, 4 * H), lambda t, tok: (0, 0)),     # [W_ih^T ; W_hh^T]
            pl.BlockSpec((1, 4 * H), lambda t, tok: (0, 0)),         # b_ih + b_hh
            pl.BlockSpec((H, Vp), lambda t, tok: (0, 0)),            # W_out^T (padded)
            pl.BlockSpec((1, Vp), lambda t, tok: (0, 0)),            # b_out (padded)
        ],
        out_specs=[
            pl.BlockSpec((1, 1, Vp), lambda t, tok: (t, 0, 0)),      # per-step log-probs
            pl.BlockSpec((1, H), lambda t, tok: (0, 0)),             # h (resident accumulator)
            pl.BlockSpec((1, H), lambda t, tok: (0, 0)),             # c (resident accumulator)
        ],
    )

    logp_p, h_out, c_out = pl.pallas_call(
        _decoder_kernel,
        out_shape=(
            jax.ShapeDtypeStruct((T, 1, Vp), jnp.float32),
            jax.ShapeDtypeStruct((1, H), jnp.float32),
            jax.ShapeDtypeStruct((1, H), jnp.float32),
        ),
        grid_spec=grid_spec,
        compiler_params=pltpu.CompilerParams(
            dimension_semantics=("arbitrary",)),   # sequential recurrence over steps
    )(tok, emb, h_in, c_in, w_xh, b, w_out, b_out)

    logp = logp_p.reshape(T, Vp)[:, :V]
    return logp, h_out.reshape(1, 1, H), c_out.reshape(1, 1, H)


def simple_decoder_rnn_forward(token, hidden_state, cell_state, params):
    """Exact single-step equivalent of SimpleDecoderRNN.forward (T = 1)."""
    tokens = jnp.asarray(token, jnp.int32).reshape((1,))
    return simple_decoder_rnn_decode(tokens, hidden_state, cell_state, params)


def init_params(input_size, hidden_size, key, lane_pad=128):
    """Deterministic synthetic parameters matching nn.Embedding + nn.LSTM + nn.Linear shapes."""
    V, H = input_size, hidden_size
    Vp = ((V + lane_pad - 1) // lane_pad) * lane_pad
    keys = jax.random.split(key, 7)
    bound = 1.0 / jnp.sqrt(hidden_size)
    embedding = jax.random.normal(keys[0], (V, H), jnp.float32)
    w_ih = jax.random.uniform(keys[1], (4 * H, H), jnp.float32, -bound, bound)
    w_hh = jax.random.uniform(keys[2], (4 * H, H), jnp.float32, -bound, bound)
    b_ih = jax.random.uniform(keys[3], (4 * H,), jnp.float32, -bound, bound)
    b_hh = jax.random.uniform(keys[4], (4 * H,), jnp.float32, -bound, bound)
    w_out = jax.random.uniform(keys[5], (V, H), jnp.float32, -bound, bound)
    b_out = jax.random.uniform(keys[6], (V,), jnp.float32, -bound, bound)

    # ReLU commutes with the embedding gather -> pre-apply it to the table.
    emb_relu = jnp.maximum(embedding, 0.0)

    # Zero-pad W_out^T columns / bias lanes so projection, log-softmax reductions and
    # output stores are lane-dense; padded bias lanes are -1e30 so they never affect
    # the normalization.
    w_out_t = jnp.zeros((H, Vp), jnp.float32).at[:, :V].set(w_out.T)
    b_out_p = jnp.full((1, Vp), _NEG_INF, jnp.float32).at[0, :V].set(b_out)

    return {
        # (V, 1, H) so the per-row block (1, 1, H) trivially satisfies TPU tiling rules.
        "embedding": emb_relu.reshape(V, 1, H).astype(jnp.bfloat16),
        "w_xh": jnp.concatenate([w_ih.T, w_hh.T], axis=0).astype(jnp.bfloat16),  # (2H, 4H)
        "lstm_bias": (b_ih + b_hh).reshape(1, 4 * H),
        "w_out": w_out_t.astype(jnp.bfloat16),                                   # (H, Vp)
        "b_out": b_out_p,                                                        # (1, Vp)
    }


def _reference_decode(tokens, hidden_state, cell_state, params):
    """Pure-JAX reference of the same T-step decode (same bf16 weights, f32 math)."""
    emb = params["embedding"]
    V, _, H = emb.shape
    h = hidden_state.reshape(1, H).astype(jnp.float32)
    c = cell_state.reshape(1, H).astype(jnp.float32)
    tok = jnp.clip(jnp.asarray(tokens, jnp.int32).reshape((-1,)), 0, V - 1)
    outs = []
    for t in range(tok.shape[0]):
        x = emb[tok[t], 0].reshape(1, H)                       # bf16, ReLU pre-applied
        gates = (jnp.dot(x, params["w_xh"][:H, :], preferred_element_type=jnp.float32)
                 + jnp.dot(h.astype(jnp.bfloat16), params["w_xh"][H:, :],
                           preferred_element_type=jnp.float32)
                 + params["lstm_bias"])
        i_g = jax.nn.sigmoid(gates[:, 0 * H:1 * H])
        f_g = jax.nn.sigmoid(gates[:, 1 * H:2 * H])
        g_g = jnp.tanh(gates[:, 2 * H:3 * H])
        o_g = jax.nn.sigmoid(gates[:, 3 * H:4 * H])
        c = f_g * c + i_g * g_g
        h = o_g * jnp.tanh(c)
        logits = (jnp.dot(h.astype(jnp.bfloat16), params["w_out"],
                          preferred_element_type=jnp.float32)
                  + params["b_out"])
        outs.append(jax.nn.log_softmax(logits, axis=1)[:, :V])
    return jnp.concatenate(outs, axis=0), h.reshape(1, 1, H), c.reshape(1, 1, H)


if __name__ == "__main__":
    input_size = 29       # SOS, EOS, UNK, a-z  (vocab for the lab)
    hidden_size = 128     # small but lane-aligned hidden (module default is 512)
    seq_len = 8           # number of fused teacher-forced decode steps

    key = jax.random.PRNGKey(0)
    k_params, k_tok = jax.random.split(key, 2)

    params = init_params(input_size, hidden_size, k_params)
    tokens = jax.random.randint(k_tok, (seq_len,), 0, input_size, jnp.int32)
    h0 = jnp.zeros((1, 1, hidden_size), jnp.float32)   # SimpleDecoderRNN.init_h0()
    c0 = jnp.zeros((1, 1, hidden_size), jnp.float32)   # SimpleDecoderRNN.init_c0()

    # Fused T-step decode: one pallas_call, weights DMA'd once, h/c resident in VMEM.
    logp, hidden, cell = simple_decoder_rnn_decode(tokens, h0, c0, params)
    jax.block_until_ready((logp, hidden, cell))

    ref_logp, ref_h, ref_c = _reference_decode(tokens, h0, c0, params)
    assert logp.shape == (seq_len, input_size)
    assert jnp.allclose(logp, ref_logp, atol=1e-3, rtol=1e-3), "log-softmax output mismatch"
    assert jnp.allclose(hidden, ref_h, atol=1e-3, rtol=1e-3), "hidden state mismatch"
    assert jnp.allclose(cell, ref_c, atol=1e-3, rtol=1e-3), "cell state mismatch"
    assert jnp.allclose(jnp.exp(logp).sum(axis=1), 1.0, atol=1e-3), "log-softmax not normalized"

    # Single-step parity with the original module forward (T = 1).
    logp1, h1, c1 = simple_decoder_rnn_forward(tokens[0], h0, c0, params)
    jax.block_until_ready((logp1, h1, c1))
    assert jnp.allclose(logp1, ref_logp[:1], atol=1e-3, rtol=1e-3), "single-step mismatch"

    print("KERNEL_OK")
</pallas_src>

<mosaic_0001>
module attributes {stable_mosaic.version = 11 : i64} {
  func.func @_decoder_kernel(%arg0: i32, %arg1: memref<8xi32, #tpu.memory_space<smem>>, %arg2: memref<1x1x128xbf16, #tpu.memory_space<vmem>>, %arg3: memref<1x128xf32, #tpu.memory_space<vmem>>, %arg4: memref<1x128xf32, #tpu.memory_space<vmem>>, %arg5: memref<256x512xbf16, #tpu.memory_space<vmem>>, %arg6: memref<1x512xf32, #tpu.memory_space<vmem>>, %arg7: memref<128x128xbf16, #tpu.memory_space<vmem>>, %arg8: memref<1x128xf32, #tpu.memory_space<vmem>>, %arg9: memref<1x1x128xf32, #tpu.memory_space<vmem>>, %arg10: memref<1x128xf32, #tpu.memory_space<vmem>>, %arg11: memref<1x128xf32, #tpu.memory_space<vmem>>) attributes {dimension_semantics = [#tpu.dimension_semantics<arbitrary>], iteration_bounds = array<i64: 8>, scalar_prefetch = 1 : i64, scratch_operands = 0 : i64, tpu.core_type = #tpu.core_type<tc>, window_params = [{transform_indices = @transform_0, window_bounds = array<i64: 1, 1, 128>}, {pipeline_mode = #tpu.pipeline_mode<synchronous>, transform_indices = @transform_1, window_bounds = array<i64: 1, 128>}, {pipeline_mode = #tpu.pipeline_mode<synchronous>, transform_indices = @transform_2, window_bounds = array<i64: 1, 128>}, {pipeline_mode = #tpu.pipeline_mode<synchronous>, transform_indices = @transform_3, window_bounds = array<i64: 256, 512>}, {pipeline_mode = #tpu.pipeline_mode<synchronous>, transform_indices = @transform_4, window_bounds = array<i64: 1, 512>}, {pipeline_mode = #tpu.pipeline_mode<synchronous>, transform_indices = @transform_5, window_bounds = array<i64: 128, 128>}, {pipeline_mode = #tpu.pipeline_mode<synchronous>, transform_indices = @transform_6, window_bounds = array<i64: 1, 128>}, {transform_indices = @transform_7, window_bounds = array<i64: 1, 1, 128>}, {pipeline_mode = #tpu.pipeline_mode<synchronous>, transform_indices = @transform_8, window_bounds = array<i64: 1, 128>}, {pipeline_mode = #tpu.pipeline_mode<synchronous>, transform_indices = @transform_9, window_bounds = array<i64: 1, 128>}]} {
    %c0_i32 = arith.constant 0 : i32
    %0 = arith.cmpi eq, %arg0, %c0_i32 : i32
    %1 = arith.extui %0 : i1 to i32
    %c0_i32_0 = arith.constant 0 : i32
    %2 = arith.cmpi ne, %1, %c0_i32_0 : i32
    scf.if %2 {
      %c0_30 = arith.constant 0 : index
      %c0_31 = arith.constant 0 : index
      %60 = vector.load %arg3[%c0_30, %c0_31] : memref<1x128xf32, #tpu.memory_space<vmem>>, vector<1x128xf32>
      %c0_32 = arith.constant 0 : index
      %c0_33 = arith.constant 0 : index
      %61 = vector.load %arg10[%c0_32, %c0_33] : memref<1x128xf32, #tpu.memory_space<vmem>>, vector<1x128xf32>
      tpu.vector_store %arg10[%c0_32, %c0_33], %60 {strides = array<i32>} : memref<1x128xf32, #tpu.memory_space<vmem>>, vector<1x128xf32>,
      %c0_34 = arith.constant 0 : index
      %c0_35 = arith.constant 0 : index
      %62 = vector.load %arg4[%c0_34, %c0_35] : memref<1x128xf32, #tpu.memory_space<vmem>>, vector<1x128xf32>
      %c0_36 = arith.constant 0 : index
      %c0_37 = arith.constant 0 : index
      %63 = vector.load %arg11[%c0_36, %c0_37] : memref<1x128xf32, #tpu.memory_space<vmem>>, vector<1x128xf32>
      tpu.vector_store %arg11[%c0_36, %c0_37], %62 {strides = array<i32>} : memref<1x128xf32, #tpu.memory_space<vmem>>, vector<1x128xf32>,
    } else {
    }
    %c0 = arith.constant 0 : index
    %c0_1 = arith.constant 0 : index
    %c0_2 = arith.constant 0 : index
    %3 = vector.load %arg2[%c0, %c0_1, %c0_2] : memref<1x1x128xbf16, #tpu.memory_space<vmem>>, vector<1x1x128xbf16>
    %4 = vector.shape_cast %3 : vector<1x1x128xbf16> to vector<1x128xbf16>
    %c0_3 = arith.constant 0 : index
    %c0_4 = arith.constant 0 : index
    %5 = vector.load %arg10[%c0_3, %c0_4] : memref<1x128xf32, #tpu.memory_space<vmem>>, vector<1x128xf32>
    %c0_5 = arith.constant 0 : index
    %c0_6 = arith.constant 0 : index
    %6 = vector.load %arg11[%c0_5, %c0_6] : memref<1x128xf32, #tpu.memory_space<vmem>>, vector<1x128xf32>
    %c0_7 = arith.constant 0 : index
    %c0_8 = arith.constant 0 : index
    %7 = vector.load %arg5[%c0_7, %c0_8] : memref<256x512xbf16, #tpu.memory_space<vmem>>, vector<128x512xbf16>
    %cst = arith.constant dense<0.000000e+00> : vector<1x512xf32>
    %8 = tpu.matmul %4, %7, %cst {dimension_numbers = #tpu.dot_dimension_numbers<[1], [0], [0], [1], [0, 0, 1, 1], [], []>} : vector<1x128xbf16>, vector<128x512xbf16>, vector<1x512xf32> -> vector<1x512xf32>
    %9 = arith.truncf %5 : vector<1x128xf32> to vector<1x128xbf16>
    %c128 = arith.constant 128 : index
    %c0_9 = arith.constant 0 : index
    %10 = vector.load %arg5[%c128, %c0_9] : memref<256x512xbf16, #tpu.memory_space<vmem>>, vector<128x512xbf16>
    %cst_10 = arith.constant dense<0.000000e+00> : vector<1x512xf32>
    %11 = tpu.matmul %9, %10, %cst_10 {dimension_numbers = #tpu.dot_dimension_numbers<[1], [0], [0], [1], [0, 0, 1, 1], [], []>} : vector<1x128xbf16>, vector<128x512xbf16>, vector<1x512xf32> -> vector<1x512xf32>
    %12 = arith.addf %8, %11 : vector<1x512xf32>
    %c0_11 = arith.constant 0 : index
    %c0_12 = arith.constant 0 : index
    %13 = vector.load %arg6[%c0_11, %c0_12] : memref<1x512xf32, #tpu.memory_space<vmem>>, vector<1x512xf32>
    %14 = arith.addf %12, %13 : vector<1x512xf32>
    %15 = vector.extract_strided_slice %14 {offsets = [0, 0], sizes = [1, 128], strides = [1, 1]} : vector<1x512xf32> to vector<1x128xf32>
    %16 = arith.negf %15 : vector<1x128xf32>
    %17 = math.exp %16 : vector<1x128xf32>
    %cst_13 = arith.constant 1.000000e+00 : f32
    %18 = vector.broadcast %cst_13 : f32 to vector<1x128xf32>
    %19 = arith.addf %18, %17 : vector<1x128xf32>
    %20 = arith.divf %18, %19 : vector<1x128xf32>
    %21 = vector.extract_strided_slice %14 {offsets = [0, 128], sizes = [1, 128], strides = [1, 1]} : vector<1x512xf32> to vector<1x128xf32>
    %22 = arith.negf %21 : vector<1x128xf32>
    %23 = math.exp %22 : vector<1x128xf32>
    %cst_14 = arith.constant 1.000000e+00 : f32
    %24 = vector.broadcast %cst_14 : f32 to vector<1x128xf32>
    %25 = arith.addf %24, %23 : vector<1x128xf32>
    %26 = arith.divf %24, %25 : vector<1x128xf32>
    %27 = vector.extract_strided_slice %14 {offsets = [0, 256], sizes = [1, 128], strides = [1, 1]} : vector<1x512xf32> to vector<1x128xf32>
    %28 = math.tanh %27 : vector<1x128xf32>
    %29 = vector.extract_strided_slice %14 {offsets = [0, 384], sizes = [1, 128], strides = [1, 1]} : vector<1x512xf32> to vector<1x128xf32>
    %30 = arith.negf %29 : vector<1x128xf32>
    %31 = math.exp %30 : vector<1x128xf32>
    %cst_15 = arith.constant 1.000000e+00 : f32
    %32 = vector.broadcast %cst_15 : f32 to vector<1x128xf32>
    %33 = arith.addf %32, %31 : vector<1x128xf32>
    %34 = arith.divf %32, %33 : vector<1x128xf32>
    %35 = arith.mulf %26, %6 : vector<1x128xf32>
    %36 = arith.mulf %20, %28 : vector<1x128xf32>
    %37 = arith.addf %35, %36 : vector<1x128xf32>
    %38 = math.tanh %37 : vector<1x128xf32>
    %39 = arith.mulf %34, %38 : vector<1x128xf32>
    %40 = arith.truncf %39 : vector<1x128xf32> to vector<1x128xbf16>
    %c0_16 = arith.constant 0 : index
    %c0_17 = arith.constant 0 : index
    %41 = vector.load %arg7[%c0_16, %c0_17] : memref<128x128xbf16, #tpu.memory_space<vmem>>, vector<128x128xbf16>
    %cst_18 = arith.constant dense<0.000000e+00> : vector<1x128xf32>
    %42 = tpu.matmul %40, %41, %cst_18 {dimension_numbers = #tpu.dot_dimension_numbers<[1], [0], [0], [1], [0, 0, 1, 1], [], []>} : vector<1x128xbf16>, vector<128x128xbf16>, vector<1x128xf32> -> vector<1x128xf32>
    %c0_19 = arith.constant 0 : index
    %c0_20 = arith.constant 0 : index
    %43 = vector.load %arg8[%c0_19, %c0_20] : memref<1x128xf32, #tpu.memory_space<vmem>>, vector<1x128xf32>
    %44 = arith.addf %42, %43 : vector<1x128xf32>
    %cst_21 = arith.constant dense<0xFF800000> : vector<1xf32>
    %45 = vector.multi_reduction <maximumf>, %44, %cst_21 [1] : vector<1x128xf32> to vector<1xf32>
    %46 = vector.shape_cast %45 : vector<1xf32> to vector<1x1xf32>
    %47 = vector.broadcast %46 : vector<1x1xf32> to vector<1x128xf32>
    %48 = arith.subf %44, %47 : vector<1x128xf32>
    %49 = math.exp %48 : vector<1x128xf32>
    %cst_22 = arith.constant dense<0.000000e+00> : vector<1xf32>
    %50 = vector.multi_reduction <add>, %49, %cst_22 [1] : vector<1x128xf32> to vector<1xf32>
    %51 = vector.shape_cast %50 : vector<1xf32> to vector<1x1xf32>
    %52 = math.log %51 : vector<1x1xf32>
    %53 = arith.addf %46, %52 : vector<1x1xf32>
    %54 = vector.broadcast %53 : vector<1x1xf32> to vector<1x128xf32>
    %55 = arith.subf %44, %54 : vector<1x128xf32>
    %56 = vector.shape_cast %55 : vector<1x128xf32> to vector<1x1x128xf32>
    %c0_23 = arith.constant 0 : index
    %c0_24 = arith.constant 0 : index
    %c0_25 = arith.constant 0 : index
    %57 = vector.load %arg9[%c0_23, %c0_24, %c0_25] : memref<1x1x128xf32, #tpu.memory_space<vmem>>, vector<1x1x128xf32>
    tpu.vector_store %arg9[%c0_23, %c0_24, %c0_25], %56 {strides = array<i32>} : memref<1x1x128xf32, #tpu.memory_space<vmem>>, vector<1x1x128xf32>,
    %c0_26 = arith.constant 0 : index
    %c0_27 = arith.constant 0 : index
    %58 = vector.load %arg10[%c0_26, %c0_27] : memref<1x128xf32, #tpu.memory_space<vmem>>, vector<1x128xf32>
    tpu.vector_store %arg10[%c0_26, %c0_27], %39 {strides = array<i32>} : memref<1x128xf32, #tpu.memory_space<vmem>>, vector<1x128xf32>,
    %c0_28 = arith.constant 0 : index
    %c0_29 = arith.constant 0 : index
    %59 = vector.load %arg11[%c0_28, %c0_29] : memref<1x128xf32, #tpu.memory_space<vmem>>, vector<1x128xf32>
    tpu.vector_store %arg11[%c0_28, %c0_29], %37 {strides = array<i32>} : memref<1x128xf32, #tpu.memory_space<vmem>>, vector<1x128xf32>,
    return
  }
  func.func @transform_0(%arg0: i32, %arg1: memref<8xi32, #tpu.memory_space<smem>>) -> (i32, i32, i32) {
    %0 = arith.index_cast %arg0 : i32 to index
    %1 = memref.load %arg1[%0] : memref<8xi32, #tpu.memory_space<smem>>
    %c0_i32 = arith.constant 0 : i32
    %c0_i32_0 = arith.constant 0 : i32
    %c0_i32_1 = arith.constant 0 : i32
    return %1, %c0_i32, %c0_i32_0 : i32, i32, i32
  }
  func.func @transform_1(%arg0: i32, %arg1: memref<8xi32, #tpu.memory_space<smem>>) -> (i32, i32) {
    %c0_i32 = arith.constant 0 : i32
    %c0_i32_0 = arith.constant 0 : i32
    %c0_i32_1 = arith.constant 0 : i32
    return %c0_i32, %c0_i32_0 : i32, i32
  }
  func.func @transform_2(%arg0: i32, %arg1: memref<8xi32, #tpu.memory_space<smem>>) -> (i32, i32) {
    %c0_i32 = arith.constant 0 : i32
    %c0_i32_0 = arith.constant 0 : i32
    %c0_i32_1 = arith.constant 0 : i32
    return %c0_i32, %c0_i32_0 : i32, i32
  }
  func.func @transform_3(%arg0: i32, %arg1: memref<8xi32, #tpu.memory_space<smem>>) -> (i32, i32) {
    %c0_i32 = arith.constant 0 : i32
    %c0_i32_0 = arith.constant 0 : i32
    %c0_i32_1 = arith.constant 0 : i32
    return %c0_i32, %c0_i32_0 : i32, i32
  }
  func.func @transform_4(%arg0: i32, %arg1: memref<8xi32, #tpu.memory_space<smem>>) -> (i32, i32) {
    %c0_i32 = arith.constant 0 : i32
    %c0_i32_0 = arith.constant 0 : i32
    %c0_i32_1 = arith.constant 0 : i32
    return %c0_i32, %c0_i32_0 : i32, i32
  }
  func.func @transform_5(%arg0: i32, %arg1: memref<8xi32, #tpu.memory_space<smem>>) -> (i32, i32) {
    %c0_i32 = arith.constant 0 : i32
    %c0_i32_0 = arith.constant 0 : i32
    %c0_i32_1 = arith.constant 0 : i32
    return %c0_i32, %c0_i32_0 : i32, i32
  }
  func.func @transform_6(%arg0: i32, %arg1: memref<8xi32, #tpu.memory_space<smem>>) -> (i32, i32) {
    %c0_i32 = arith.constant 0 : i32
    %c0_i32_0 = arith.constant 0 : i32
    %c0_i32_1 = arith.constant 0 : i32
    return %c0_i32, %c0_i32_0 : i32, i32
  }
  func.func @transform_7(%arg0: i32, %arg1: memref<8xi32, #tpu.memory_space<smem>>) -> (i32, i32, i32) {
    %c0_i32 = arith.constant 0 : i32
    %c0_i32_0 = arith.constant 0 : i32
    %c0_i32_1 = arith.constant 0 : i32
    return %arg0, %c0_i32, %c0_i32_0 : i32, i32, i32
  }
  func.func @transform_8(%arg0: i32, %arg1: memref<8xi32, #tpu.memory_space<smem>>) -> (i32, i32) {
    %c0_i32 = arith.constant 0 : i32
    %c0_i32_0 = arith.constant 0 : i32
    %c0_i32_1 = arith.constant 0 : i32
    return %c0_i32, %c0_i32_0 : i32, i32
  }
  func.func @transform_9(%arg0: i32, %arg1: memref<8xi32, #tpu.memory_space<smem>>) -> (i32, i32) {
    %c0_i32 = arith.constant 0 : i32
    %c0_i32_0 = arith.constant 0 : i32
    %c0_i32_1 = arith.constant 0 : i32
    return %c0_i32, %c0_i32_0 : i32, i32
  }
}

</mosaic_0001>

<bundles_post_ra>
// kernel: tpu_custom_call.1
= control target key start
LH: loop header
LB: loop body
LE: loop exit
PB: predicated region body
PF: predicated region fallthrough
CT: control target
= control target key end

     0   :  { %s2091_s0 = inlined_call_operand.vmem [shape: s32[8], index: 0, kind: input, shape index: {}]   ;;  %s2092_s1 = inlined_call_operand.vmem [shape: bf16[29,1,128], index: 1, kind: input, shape index: {}]   ;;  %s2093_s2 = inlined_call_operand.vmem [shape: f32[1,128], index: 2, kind: input, shape index: {}]   ;;  %s2094_s3 = inlined_call_operand.vmem [shape: f32[1,128], index: 3, kind: input, shape index: {}]   ;;  %s2095_s4 = inlined_call_operand.hbm [shape: bf16[256,512], index: 4, kind: input, shape index: {}]   ;;  %s2096_s5 = inlined_call_operand.hbm [shape: f32[1,512], index: 5, kind: input, shape index: {}]   ;;  %s2097_s6 = inlined_call_operand.vmem [shape: bf16[128,128], index: 6, kind: input, shape index: {}]   ;;  %s2098_s7 = inlined_call_operand.vmem [shape: f32[1,128], index: 7, kind: input, shape index: {}]   ;;  %s2099_s8 = inlined_call_operand.hbm [shape: f32[8,1,128], index: 8, kind: output, shape index: {0}]   ;;  %s2100_s9 = inlined_call_operand.hbm [shape: f32[1,128], index: 9, kind: output, shape index: {1}]   ;;  %s2101_s10 = inlined_call_operand.hbm [shape: f32[1,128], index: 10, kind: output, shape index: {2}]  }
   0x1   :  { %s16_s15 = sshll.u32 %s2091_s0, 4  ;;  %s17_s15 = int_to_ptr.vmem [resolvable:$true] %s16_s15 }
   0x2   :  { %s1550_s16 = scalar_lea.vmem %s17_s15, 16  ;;  %p1555_p1 = scmp.lt.s32.totalorder %s17_s15, %s17_s15 }
   0x3   :  { %p1551_p0 = scmp.ne.s32.totalorder %s17_s15, %s1550_s16  ;;  %p1556_p2 = scmp.lt.s32.totalorder %s1550_s16, %s1550_s16 }
   0x5   :  { %p1557_p3 = por %p1556_p2, %p1555_p1 }
   0x7   :  { %p1558_p4 = pnand %p1557_p3, %p1551_p0 }
   0x9   :  { %1561 = shalt.err (!%p1558_p4)  }
   0xa   :  { %s1748_s17 = smov [#allocation3]  }
   0xb   :  { %19 = dma.vmem_to_smem %s17_s15, 16, %s1748_s17, [#allocation2] }
   0xc   :  { %1714 = dma.done.wait [#allocation2], 16 }
   0xd   :  { %1715 = vsyncadd [#allocation2], 4294967280 }
   0xe   :  { %21 = sfence }
   0xf   :  { %22 = vsyncpa [#allocation5], 0 }
  0x10   :  { %23 = vsyncpa [#allocation8], 0 }
  0x11   :  { %24 = vsyncpa [#allocation6], 0 }
  0x12   :  { %26 = vsyncpa [#allocation6 + $0x1], 0 }
  0x13   :  { %27 = vsyncpa [#allocation11], 0  ;;  %s1817_s18 = smov 0   ;;  %s1819_s0 = smov 0  }
  0x14   :  { %s1821_s19 = smov 0   ;;  %s1823_s20 = smov 0  }
  0x15 LB: > { %2109 = sst [smem:[#allocation18_spill]] %s1742_s19  ;;  %s1838_s21 = sadd.s32 4294967295, %s1746_s20   ;;  %s1746_s20 = sphi %s1823_s20, %s2132_s20   ;;  %s1742_s19 = sphi %s1821_s19, %s2134_s19   ;;  %s1738_s0 = sphi %s1819_s0, %s2136_s0   ;;  %s1734_s18 = sphi %s1817_s18, %s2135_s18  }
  0x16   : > { %s1226_s22 = sadd.s32 4294967294, %s1746_s20   ;;  %s1842_s23 = sadd.s32 1, %s1746_s20  }
  0x17   : > { %2110 = sst [smem:[#allocation19_spill]] %s1842_s23  ;;  %s194_s24 = sadd.s32 1, %s1742_s19 }
  0x18   : > { %s191_s25 = ssub.s32 %s1746_s20, %s1842_s23  ;;  %p204_p5 = scmp.ne.s32.totalorder %s1742_s19, %s1738_s0 }
  0x19   : > { %p192_p6 = scmp.eq.s32.totalorder %s191_s25, 0  ;;  %p2102_p7 = scmp.eq.s32.totalorder %s1838_s21, 7 }
  0x1a   : > { %p210_p8 = scmp.ne.s32.totalorder %s1738_s0, %s1734_s18  ;;  %p211_p9 = scmp.eq.s32.totalorder %s1226_s22, 7 }
  0x1b   : > { %s1853_s26 = scalar_select %p192_p6, %s1742_s19, %s194_s24  }
  0x1c   : > { %p1857_p10 = por %p2102_p7, %p204_p5  ;;  %p1861_p11 = por %p211_p9, %p210_p8 }
  0x1d   : > { %2111 = sst [smem:[#allocation20_spill]] %s1853_s26  ;;  %p1227_p12 = scmp.ge.s32.totalorder %s1746_s20, 1 }
  0x1e   : > { %s2112_s27 = scalar_select %p1857_p10, 1, 0 }
  0x1f   : > { %s2113_s28 = scalar_select %p1861_p11, 1, 0 }
  0x20   : > { %p260_p13 = scmp.lt.s32.totalorder %s1746_s20, 9  ;;  %p2103_p1 = scmp.eq.s32.totalorder %s1838_s21, 0 }
  0x21   : > { %s1749_s30 = smov [#allocation4]   ;;  %s1750_s13 = smov [#allocation7]  }
  0x22   : > { %p1869_p2 = pnand %p1227_p12, %p260_p13  ;;  %s278_s11 = sshll.u32 %s1749_s30, 4  ;;  %s279_s11 = int_to_ptr.vmem [resolvable:$true] %s278_s11 }
  0x23   : > { %s292_s14 = sshll.u32 %s1750_s13, 4  ;;  %s1562_s17 = scalar_lea.hbm %s2095_s4, 8192  ;;  %s1881_s14 = int_to_ptr.vmem [resolvable:$true] %s292_s14 }
  0x24   : > { %s2114_s29 = scalar_select %p1869_p2, 1, 0 }
  0x25   : > { %p1364_p3 = pneg %p1869_p2  ;;  %p1563_p5 = scmp.ne.s32.totalorder %s2095_s4, %s1562_s17 }
  0x26   : > { %p1569_p12 = scmp.lt.u32.totalorder %s1562_s17, %s2095_s4 }
  0x27   : > { %p1877_p4 = pnand %p2103_p1, %p1364_p3 }
  0x29   : > { %p1564_p6 = pneg %p1877_p4 }
  0x2b   : > { %p1565_p8 = pnand %p1564_p6, %p1563_p5 }
  0x2d   : > { %p1566_p9 = pneg %p1565_p8 }
  0x2f   : > { %p1571_p13 = pnand %p1569_p12, %p1566_p9 }
  0x31   : > { %1574 = shalt.err (!%p1571_p13)
}
  0x32   : > { %s1575_s13 = scalar_lea.vmem %s279_s11, 8192  ;;  %p1583_p1 = scmp.lt.s32.totalorder %s279_s11, %s279_s11 }
  0x33   : > { %p1576_p3 = scmp.ne.s32.totalorder %s279_s11, %s1575_s13  ;;  %p1584_p11 = scmp.lt.s32.totalorder %s1575_s13, %s1575_s13 }
  0x35   : > { %p1578_p7 = pnand %p1576_p3, %p1564_p6  ;;  %p1585_p10 = por %p1584_p11, %p1583_p1 }
  0x37   : > { %p1579_p0 = pneg %p1578_p7 }
  0x39   : > { %p1586_p2 = pnand %p1585_p10, %p1579_p0 }
  0x3b   : > { %1589 = shalt.err (!%p1586_p2)
}
  0x3c   : > { %s1751_s15 = smov 256   ;;  %s1752_s16 = smov 16  }
  0x3d   : > { %1367 = dma.hbm_to_vmem [thread:$0]  (!%p1877_p4), %s2095_s4, 8192, %s279_s11, [#allocation5], %s1751_s15, %s1751_s15, %s1752_s16  }
  0x3e   : > { %s1590_s30 = scalar_lea.hbm %s2096_s5, 64 }
  0x3f   : > { %p1591_p7 = scmp.ne.s32.totalorder %s2096_s5, %s1590_s30  ;;  %p1597_p0 = scmp.lt.u32.totalorder %s1590_s30, %s2096_s5 }
  0x41   : > { %p1593_p10 = pnand %p1591_p7, %p1564_p6 }
  0x43   : > { %p1594_p11 = pneg %p1593_p10 }
  0x45   : > { %p1599_p1 = pnand %p1597_p0, %p1594_p11 }
  0x47   : > { %1602 = shalt.err (!%p1599_p1)
}
  0x48   : > { %s1603_s11 = scalar_lea.vmem %s1881_s14, 64  ;;  %p1611_p9 = scmp.lt.s32.totalorder %s1881_s14, %s1881_s14 }
  0x49   : > { %p1604_p2 = scmp.ne.s32.totalorder %s1881_s14, %s1603_s11  ;;  %p1612_p12 = scmp.lt.s32.totalorder %s1603_s11, %s1603_s11 }
  0x4b   : > { %p1606_p5 = pnand %p1604_p2, %p1564_p6  ;;  %p1613_p13 = por %p1612_p12, %p1611_p9 }
  0x4d   : > { %p1607_p8 = pneg %p1606_p5 }
  0x4f   : > { %p1614_p3 = pnand %p1613_p13, %p1607_p8 }
  0x51   : > { %1617 = shalt.err (!%p1614_p3)
}
  0x52   : > { %1370 = dma.hbm_to_vmem [thread:$0]  (!%p1877_p4), %s2096_s5, 64, %s1881_s14, [#allocation8]  }
  0x53   : > { %p2116_p7 = scmp.ne.s32.totalorder %s2114_s29, 0 }
  0x54   : > { %p2117_p10 = scmp.eq.s32.totalorder (!%p2116_p7), %s1838_s21, 0 }
  0x55   : > { %319 = sbr.rel (%p2116_p7) target bundleno = 986 (0x3da), region = 48 }
  0x5c   : > { %1717 = dma.done.wait (%p2117_p10), [#allocation5], 8192   ;;  %p2118_p6 = pmov %p2117_p10 }
  0x5e   : > { %1719 = vsyncadd (%p2118_p6), [#allocation5], 4294959104  ;;  %p2119_p11 = pmov %p2118_p6 }
  0x5f   : > { %p2120_p0 = pmov %p2118_p6 }
  0x60   : > { %1721 = dma.done.wait (%p2119_p11), [#allocation8], 64  }
  0x61   : > { %1723 = vsyncadd (%p2120_p0), [#allocation8], 4294967232  ;;  %s351_s26 = sand.u32 1, %s1738_s0   ;;  %s357_s12 = sld [smem:[#allocation3 + %s1838_s21]] }
  0x62   : > { %s1950_s16 = scalar_lea.vmem [#allocation9], %s351_s26  ;;  %p2121_p1 = scmp.ne.s32.totalorder %s1838_s21, 0 }
  0x63   : > { %v367_v0 = vld [vmem:[%s2093_s2] sm:$0x1] (!%p2121_p1) }
  0x64   : > { %366 = sbr.rel (%p2121_p1) target bundleno = 107 (0x6b), region = 60  ;;  %v369_v1 = vld [vmem:[%s2094_s3] sm:$0x1] (!%p2121_p1)  ;;  %368 = vst [vmem:[#allocation10] sm:$0x1] (!%p2121_p1), %v367_v0 }
  0x65   : > { %370 = vst [vmem:[#allocation12] sm:$0x1] (!%p2121_p1), %v369_v1 }
  0x67   : > { %p358_p4 = scmp.lt.s32.totalorder %s357_s12, 28 }
  0x69   : > { %s2138_s12 = smov (!%p358_p4, %s357_s12), 28 }
  0x6a   : > { %s360_s15 = scalar_lea.vmem %s2092_s1, %s2138_s12 }
  0x6b PF: > { %v1426_v2 = vld [vmem:[#allocation4 + $0x104] ss:$16 sps:$4 sm:$0xff]   ;;  %v1428_v3 = vld [vmem:[#allocation4 + $0x10c] ss:$16 sps:$4 sm:$0xff]   ;;  %v1753_v4 = vmov 0   ;;  %vm1755_vm0 = vmmov 0  }
  0x6c   : > { %631 = vmatprep.mubr.bf16.mxu0 %v1753_v4  ;;  %672 = vmatprep.mubr.bf16.mxu1 %v1753_v4  ;;  %v1430_v5 = vld [vmem:[#allocation4 + $0x100] ss:$16 sps:$4 sm:$0xff]   ;;  %v1431_v6 = vld [vmem:[#allocation4 + $0x108] ss:$16 sps:$4 sm:$0xff]   ;;  %v1432_v7 = vld [vmem:[#allocation4 + $0x124] ss:$16 sps:$4 sm:$0xff]  }
  0x6d   : > { %599 = vmatprep.subr.bf16.mxu0 %v1426_v2  ;;  %640 = vmatprep.subr.bf16.mxu1 %v1428_v3  ;;  %v1434_v8 = vld [vmem:[#allocation4 + $0x12c] ss:$16 sps:$4 sm:$0xff]   ;;  %v1436_v9 = vld [vmem:[#allocation4 + $0x120] ss:$16 sps:$4 sm:$0xff]   ;;  %v1437_v10 = vld [vmem:[#allocation4 + $0x128] ss:$16 sps:$4 sm:$0xff]  }
  0x6e   : > { %600 = vmatpush1.bf16.msra.mxu0 %v1430_v5  ;;  %641 = vmatpush1.bf16.msra.mxu1 %v1431_v6  ;;  %v1438_v11 = vld [vmem:[#allocation4 + $0x144] ss:$16 sps:$4 sm:$0xff]   ;;  %v1440_v12 = vld [vmem:[#allocation4 + $0x14c] ss:$16 sps:$4 sm:$0xff]   ;;  %v1442_v13 = vld [vmem:[#allocation4 + $0x140] ss:$16 sps:$4 sm:$0xff]  }
  0x6f   : > { %601 = vmatprep.subr.bf16.mxu0 %v1432_v7  ;;  %642 = vmatprep.subr.bf16.mxu1 %v1434_v8  ;;  %v1443_v14 = vld [vmem:[#allocation4 + $0x148] ss:$16 sps:$4 sm:$0xff]   ;;  %v1444_v15 = vld [vmem:[#allocation4 + $0x164] ss:$16 sps:$4 sm:$0xff]   ;;  %v1446_v16 = vld [vmem:[#allocation4 + $0x16c] ss:$16 sps:$4 sm:$0xff]  }
  0x70   : > { %v1448_v17 = vld [vmem:[#allocation4 + $0x160] ss:$16 sps:$4 sm:$0xff]   ;;  %v1449_v18 = vld [vmem:[#allocation4 + $0x168] ss:$16 sps:$4 sm:$0xff]   ;;  %v1450_v19 = vld [vmem:[#allocation4 + $0x184] ss:$16 sps:$4 sm:$0xff]  }
  0x71   : > { %v1452_v20 = vld [vmem:[#allocation4 + $0x18c] ss:$16 sps:$4 sm:$0xff]   ;;  %v1454_v21 = vld [vmem:[#allocation4 + $0x180] ss:$16 sps:$4 sm:$0xff]   ;;  %v1455_v22 = vld [vmem:[#allocation4 + $0x188] ss:$16 sps:$4 sm:$0xff]  }
  0x72   : > { %602 = vmatpush1.bf16.msra.mxu0 %v1436_v9  ;;  %643 = vmatpush1.bf16.msra.mxu1 %v1437_v10  ;;  %v1456_v23 = vld [vmem:[#allocation4 + $0x1a4] ss:$16 sps:$4 sm:$0xff]   ;;  %v1458_v24 = vld [vmem:[#allocation4 + $0x1ac] ss:$16 sps:$4 sm:$0xff]   ;;  %v1460_v25 = vld [vmem:[#allocation4 + $0x1a0] ss:$16 sps:$4 sm:$0xff]  }
  0x73   : > { %603 = vmatprep.subr.bf16.mxu0 %v1438_v11  ;;  %644 = vmatprep.subr.bf16.mxu1 %v1440_v12  ;;  %v1461_v26 = vld [vmem:[#allocation4 + $0x1a8] ss:$16 sps:$4 sm:$0xff]   ;;  %v1462_v27 = vld [vmem:[#allocation4 + $0x1c4] ss:$16 sps:$4 sm:$0xff]   ;;  %v1464_v28 = vld [vmem:[#allocation4 + $0x1cc] ss:$16 sps:$4 sm:$0xff]  }
  0x74   : > { %v1466_v29 = vld [vmem:[#allocation4 + $0x1c0] ss:$16 sps:$4 sm:$0xff]   ;;  %v1467_v30 = vld [vmem:[#allocation4 + $0x1c8] ss:$16 sps:$4 sm:$0xff]   ;;  %v1468_v31 = vld [vmem:[#allocation4 + $0x1e4] ss:$16 sps:$4 sm:$0xff]  }
  0x75   : > { %v1470_v32 = vld [vmem:[#allocation4 + $0x1ec] ss:$16 sps:$4 sm:$0xff]   ;;  %v1472_v33 = vld [vmem:[#allocation4 + $0x1e0] ss:$16 sps:$4 sm:$0xff]   ;;  %v1473_v34 = vld [vmem:[#allocation4 + $0x1e8] ss:$16 sps:$4 sm:$0xff]  }
  0x76   : > { %604 = vmatpush1.bf16.msra.mxu0 %v1442_v13  ;;  %645 = vmatpush1.bf16.msra.mxu1 %v1443_v14  ;;  %v372_v35 = vld [vmem:[#allocation10] sm:$0x1]  ;;  %v1479_v37 = vld [vmem:[#allocation4 + $0xc] ss:$16 sps:$4 sm:$0xff]   ;;  %v1474_v39 = vld [vmem:[#allocation4] ss:$16 sps:$4 sm:$0xff]  }
  0x77   : > { %605 = vmatprep.subr.bf16.mxu0 %v1444_v15  ;;  %646 = vmatprep.subr.bf16.mxu1 %v1446_v16  ;;  %v1476_v36 = vld [vmem:[#allocation4 + $0x4] ss:$16 sps:$4 sm:$0xff]   ;;  %v406_v38 = vpack.c.bf16 %v372_v35, %v372_v35  ;;  %v1477_v40 = vld [vmem:[#allocation4 + $0x8] ss:$16 sps:$4 sm:$0xff]   ;;  %v1485_v42 = vld [vmem:[#allocation4 + $0x2c] ss:$16 sps:$4 sm:$0xff]  }
  0x78   : > { %v1482_v41 = vld [vmem:[#allocation4 + $0x24] ss:$16 sps:$4 sm:$0xff]   ;;  %v1480_v43 = vld [vmem:[#allocation4 + $0x20] ss:$16 sps:$4 sm:$0xff]   ;;  %v1483_v44 = vld [vmem:[#allocation4 + $0x28] ss:$16 sps:$4 sm:$0xff]  }
  0x79   : > { %v1488_v45 = vld [vmem:[#allocation4 + $0x44] ss:$16 sps:$4 sm:$0xff]   ;;  %v1491_v46 = vld [vmem:[#allocation4 + $0x4c] ss:$16 sps:$4 sm:$0xff]   ;;  %v1486_v47 = vld [vmem:[#allocation4 + $0x40] ss:$16 sps:$4 sm:$0xff]  }
  0x7a   : > { %606 = vmatpush1.bf16.msra.mxu0 %v1448_v17  ;;  %647 = vmatpush1.bf16.msra.mxu1 %v1449_v18  ;;  %v1489_v48 = vld [vmem:[#allocation4 + $0x48] ss:$16 sps:$4 sm:$0xff]   ;;  %v1494_v49 = vld [vmem:[#allocation4 + $0x64] ss:$16 sps:$4 sm:$0xff]   ;;  %v1497_v50 = vld [vmem:[#allocation4 + $0x6c] ss:$16 sps:$4 sm:$0xff]  }
  0x7b   : > { %607 = vmatprep.subr.bf16.mxu0 %v1450_v19  ;;  %648 = vmatprep.subr.bf16.mxu1 %v1452_v20  ;;  %v1492_v51 = vld [vmem:[#allocation4 + $0x60] ss:$16 sps:$4 sm:$0xff]   ;;  %v1495_v52 = vld [vmem:[#allocation4 + $0x68] ss:$16 sps:$4 sm:$0xff]   ;;  %v1500_v53 = vld [vmem:[#allocation4 + $0x84] ss:$16 sps:$4 sm:$0xff]  }
  0x7c   : > { %v1503_v54 = vld [vmem:[#allocation4 + $0x8c] ss:$16 sps:$4 sm:$0xff]   ;;  %v1498_v55 = vld [vmem:[#allocation4 + $0x80] ss:$16 sps:$4 sm:$0xff]   ;;  %v1501_v56 = vld [vmem:[#allocation4 + $0x88] ss:$16 sps:$4 sm:$0xff]  }
  0x7d   : > { %v1506_v57 = vld [vmem:[#allocation4 + $0xa4] ss:$16 sps:$4 sm:$0xff]   ;;  %v1509_v58 = vld [vmem:[#allocation4 + $0xac] ss:$16 sps:$4 sm:$0xff]   ;;  %v1504_v59 = vld [vmem:[#allocation4 + $0xa0] ss:$16 sps:$4 sm:$0xff]  }
  0x7e   : > { %608 = vmatpush1.bf16.msra.mxu0 %v1454_v21  ;;  %649 = vmatpush1.bf16.msra.mxu1 %v1455_v22  ;;  %v1507_v60 = vld [vmem:[#allocation4 + $0xa8] ss:$16 sps:$4 sm:$0xff]   ;;  %v1512_v61 = vld [vmem:[#allocation4 + $0xc4] ss:$16 sps:$4 sm:$0xff]   ;;  %v1515_v62 = vld [vmem:[#allocation4 + $0xcc] ss:$16 sps:$4 sm:$0xff]  }
  0x7f   : > { %609 = vmatprep.subr.bf16.mxu0 %v1456_v23  ;;  %650 = vmatprep.subr.bf16.mxu1 %v1458_v24  ;;  %v1510_v63 = vld [vmem:[#allocation4 + $0xc0] ss:$16 sps:$4 sm:$0xff]   ;;  %v1513_v0 = vld [vmem:[#allocation4 + $0xc8] ss:$16 sps:$4 sm:$0xff]   ;;  %v1518_v1 = vld [vmem:[#allocation4 + $0xe4] ss:$16 sps:$4 sm:$0xff]   ;;  %v925_v23 = vlaneseq }
  0x80   : > { %v1521_v2 = vld [vmem:[#allocation4 + $0xec] ss:$16 sps:$4 sm:$0xff]   ;;  %v1516_v3 = vld [vmem:[#allocation4 + $0xe0] ss:$16 sps:$4 sm:$0xff]   ;;  %v1754_v7 = vmov 0.0   ;;  %vm1079_vm1 = vcmask 1040384  }
  0x81   : > { %v371_v5 = vld [vmem:[%s360_s15] sm:$0x1]  ;;  %v1523_v8 = vld [vmem:[%s2097_s6 + $0x8] sm:$0xff]   ;;  %v1524_v9 = vld [vmem:[%s2097_s6 + $0x10] sm:$0xff]   ;;  %v926_v24 = vshrl.u32 %v925_v23, 7  ;;  %s1756_s17 = smov [#allocation10]  }
  0x82   : > { %610 = vmatpush1.bf16.msra.mxu0 %v1460_v25  ;;  %651 = vmatpush1.bf16.msra.mxu1 %v1461_v26  ;;  %v1522_v6 = vld [vmem:[%s2097_s6] sm:$0xff]   ;;  %v1525_v10 = vld [vmem:[%s2097_s6 + $0x18] sm:$0xff]   ;;  %v1527_v12 = vld [vmem:[%s2097_s6 + $0x28] sm:$0xff]   ;;  %s1120_s12 = sshll.u32 %s1756_s17, 4  ;;  %p2122_p5 = scmp.eq.s32.totalorder %s1838_s21, 7  ;;  %s1121_s12 = int_to_ptr.vmem [resolvable:$true] %s1120_s12 }
  0x83   : > { %611 = vmatprep.subr.bf16.mxu0 %v1462_v27  ;;  %652 = vmatprep.subr.bf16.mxu1 %v1464_v28  ;;  %v1526_v11 = vld [vmem:[%s2097_s6 + $0x20] sm:$0xff]   ;;  %v1528_v13 = vld [vmem:[%s2097_s6 + $0x30] sm:$0xff]   ;;  %v1529_v14 = vld [vmem:[%s2097_s6 + $0x38] sm:$0xff]   ;;  %v927_v25 = vsub.s32 0, %v926_v24  ;;  %v931_v27 = vsub.s32 1, %v926_v24  ;;  %s1618_s15 = scalar_lea.vmem %s1121_s12, 16  ;;  %p1625_p12 = scmp.lt.s32.totalorder %s1121_s12, %s1121_s12 }
  0x84   : > { %v923_v26 = vld [vmem:[#allocation7] sm:$0xf]  ;;  %p1619_p2 = scmp.ne.s32.totalorder %s1121_s12, %s1618_s15  ;;  %s1624_s22 = scalar_lea.vmem %s1121_s12, 32 }
  0x85   : > { %v928_v28 = vrot.slane %v923_v26, %v927_v25  ;;  %p1626_p13 = scmp.lt.s32.totalorder %s1624_s22, %s1618_s15 }
  0x86   : > { %612 = vmatpush1.bf16.msra.mxu0 %v1466_v29  ;;  %653 = vmatpush1.bf16.msra.mxu1 %v1467_v30  ;;  %p1620_p8 = pnand %p1619_p2, %p2122_p5 }
  0x87   : > { %613 = vmatprep.subr.bf16.mxu0 %v1468_v31  ;;  %654 = vmatprep.subr.bf16.mxu1 %v1470_v32  ;;  %v932_v31 = vrot.slane %v923_v26, %v931_v27  ;;  %p1627_p3 = por %p1626_p13, %p1625_p12 }
  0x88   : > { %p1621_p9 = pneg %p1620_p8 }
  0x8a   : > { %614 = vmatpush1.bf16.msra.mxu0 %v1472_v33  ;;  %655 = vmatpush1.bf16.msra.mxu1 %v1473_v34  ;;  %p1628_p7 = pnand %p1627_p3, %p1621_p9 }
  0x8b   : > { %841 = vmatprep.subr.bf16.mxu0 %v1476_v36  ;;  %882 = vmatprep.subr.bf16.mxu1 %v1479_v37 }
  0x8d   : > { %632 = vmatmul.mubr.bf16.vlgmr.msra.gmra.mrb[0].mxu0 %v406_v38  ;;  %673 = vmatmul.mubr.bf16.vlgmr.msra.gmra.mrb[0].mxu1 %v406_v38  ;;  %v939_v38 = vsub.s32 3, %v926_v24 }
  0x8e   : > { %842 = vmatpush1.bf16.msra.mxu0 %v1474_v39  ;;  %883 = vmatpush1.bf16.msra.mxu1 %v1477_v40 }
  0x8f   : > { %843 = vmatprep.subr.bf16.mxu0 %v1482_v41  ;;  %884 = vmatprep.subr.bf16.mxu1 %v1485_v42 }
  0x90   : > { %873 = vmatprep.mubr.bf16.mxu0 %v1753_v4  ;;  %914 = vmatprep.mubr.bf16.mxu1 %v1753_v4  ;;  %v1519_v4 = vld [vmem:[#allocation4 + $0xe8] ss:$16 sps:$4 sm:$0xff]  }
  0x92   : > { %844 = vmatpush1.bf16.msra.mxu0 %v1480_v43  ;;  %885 = vmatpush1.bf16.msra.mxu1 %v1483_v44 }
  0x93   : > { %845 = vmatprep.subr.bf16.mxu0 %v1488_v45  ;;  %886 = vmatprep.subr.bf16.mxu1 %v1491_v46 }
  0x96   : > { %846 = vmatpush1.bf16.msra.mxu0 %v1486_v47  ;;  %887 = vmatpush1.bf16.msra.mxu1 %v1489_v48  ;;  %v940_v47 = vrot.slane %v923_v26, %v939_v38  ;;  %v935_v48 = vsub.s32 2, %v926_v24 }
  0x97   : > { %847 = vmatprep.subr.bf16.mxu0 %v1494_v49  ;;  %888 = vmatprep.subr.bf16.mxu1 %v1497_v50 }
  0x98   : > { %v936_v50 = vrot.slane %v923_v26, %v935_v48 }
  0x9a   : > { %848 = vmatpush1.bf16.msra.mxu0 %v1492_v51  ;;  %889 = vmatpush1.bf16.msra.mxu1 %v1495_v52 }
  0x9b   : > { %849 = vmatprep.subr.bf16.mxu0 %v1500_v53  ;;  %890 = vmatprep.subr.bf16.mxu1 %v1503_v54 }
  0x9e   : > { %850 = vmatpush1.bf16.msra.mxu0 %v1498_v55  ;;  %891 = vmatpush1.bf16.msra.mxu1 %v1501_v56 }
  0x9f   : > { %851 = vmatprep.subr.bf16.mxu0 %v1506_v57  ;;  %892 = vmatprep.subr.bf16.mxu1 %v1509_v58 }
  0xa2   : > { %852 = vmatpush1.bf16.msra.mxu0 %v1504_v59  ;;  %893 = vmatpush1.bf16.msra.mxu1 %v1507_v60  ;;  %v373_v59 = vld [vmem:[#allocation12] sm:$0x1] }
  0xa3   : > { %853 = vmatprep.subr.bf16.mxu0 %v1512_v61  ;;  %894 = vmatprep.subr.bf16.mxu1 %v1515_v62 }
  0xa6   : > { %854 = vmatpush1.bf16.msra.mxu0 %v1510_v63  ;;  %895 = vmatpush1.bf16.msra.mxu1 %v1513_v0 }
  0xa7   : > { %855 = vmatprep.subr.bf16.mxu0 %v1518_v1  ;;  %896 = vmatprep.subr.bf16.mxu1 %v1521_v2 }
  0xaa   : > { %856 = vmatpush1.bf16.msra.mxu0 %v1516_v3  ;;  %897 = vmatpush1.bf16.msra.mxu1 %v1519_v4 }
  0xab   : > { %1326 = vmatprep.subr.bf16.mxu0 %v1754_v7 }
  0xad   : > { %874 = vmatmul.mubr.bf16.vlgmr.msra.gmra.mrb[4].mxu0 %v371_v5  ;;  %915 = vmatmul.mubr.bf16.vlgmr.msra.gmra.mrb[4].mxu1 %v371_v5 }
  0xae   : > { %1327 = vmatpush3.bf16.msra.mxu0 %v1522_v6  ;;  %1342 = vmatprep.mubr.msk.bf16.mxu0 %vm1755_vm0, %v1754_v7  ;;  %v990_v6 = vld [vmem:[%s2098_s7] sm:$0x1] }
  0xaf   : > { %1328 = vmatprep.subr.bf16.mxu0 %v1754_v7 }
  0xb2   : > { %1329 = vmatpush3.bf16.msra.mxu0 %v1523_v8 }
  0xb3   : > { %1330 = vmatprep.subr.bf16.mxu0 %v1754_v7 }
  0xb6   : > { %1331 = vmatpush3.bf16.msra.mxu0 %v1524_v9 }
  0xb7   : > { %1332 = vmatprep.subr.bf16.mxu0 %v1754_v7 }
  0xba   : > { %1333 = vmatpush3.bf16.msra.mxu0 %v1525_v10 }
  0xbb   : > { %1334 = vmatprep.subr.bf16.mxu0 %v1754_v7 }
  0xbe   : > { %1335 = vmatpush3.bf16.msra.mxu0 %v1526_v11 }
  0xbf   : > { %1336 = vmatprep.subr.bf16.mxu0 %v1754_v7 }
  0xc2   : > { %1337 = vmatpush3.bf16.msra.mxu0 %v1527_v12 }
  0xc3   : > { %1338 = vmatprep.subr.bf16.mxu0 %v1754_v7 }
  0xc6   : > { %1339 = vmatpush3.bf16.msra.mxu0 %v1528_v13 }
  0xc7   : > { %1340 = vmatprep.subr.bf16.mxu0 %v1754_v7 }
  0xca   : > { %1341 = vmatpush3.bf16.msra.mxu0 %v1529_v14 }
 0x160   : > { %v633_v15 = vpop.f32.mrb[0].mxu0  ;;  %v674_v16 = vpop.f32.mrb[0].mxu1 }
 0x161   : > { %v635_v17 = vpop.f32.mrb[1].mxu0  ;;  %v676_v18 = vpop.f32.mrb[1].mxu1 }
 0x162   : > { %v637_v19 = vpop.f32.mrb[2].mxu0  ;;  %v678_v20 = vpop.f32.mrb[2].mxu1 }
 0x163   : > { %v638_v21 = vpop.f32.mrb[3].mxu0  ;;  %v679_v22 = vpop.f32.mrb[3].mxu1 }
 0x180   : > { %v875_v29 = vpop.f32.mrb[4].mxu0  ;;  %v916_v30 = vpop.f32.mrb[4].mxu1 }
 0x181   : > { %v876_v32 = vadd.f32 %v875_v29, %v633_v15  ;;  %v917_v33 = vadd.f32 %v916_v30, %v674_v16  ;;  %v877_v34 = vpop.f32.mrb[5].mxu0  ;;  %v918_v35 = vpop.f32.mrb[5].mxu1 }
 0x182   : > { %v878_v36 = vadd.f32 %v877_v34, %v635_v17  ;;  %v919_v37 = vadd.f32 %v918_v35, %v676_v18  ;;  %v879_v39 = vpop.f32.mrb[6].mxu0  ;;  %v920_v40 = vpop.f32.mrb[6].mxu1 }
 0x183   : > { %v945_v41 = vadd.f32 %v928_v28, %v876_v32  ;;  %v880_v42 = vpop.f32.mrb[7].mxu0  ;;  %v921_v43 = vpop.f32.mrb[7].mxu1  ;;  %v947_v52 = vadd.f32 %v936_v50, %v917_v33 }
 0x184   : > { %v946_v44 = vadd.f32 %v932_v31, %v878_v36  ;;  %v948_v49 = vadd.f32 %v940_v47, %v919_v37 }
 0x185   : > { %v1299_v45 = vmul.f32 -1.442695, %v945_v41 }
 0x186   : > { %v1300_v46 = vmul.f32 -1.442695, %v946_v44  ;;  %v1301_v51 = vmul.f32 -1.442695, %v948_v49 }
 0x187   : > { %1530 = vpow2.f32 %v1299_v45 }
 0x188   : > { %1532 = vpow2.f32 %v1300_v46 }
 0x189   : > { %1534 = vpow2.f32 %v1301_v51 }
 0x18a   : > { %1536 = vtanh.f32 %v947_v52 }
 0x191   : > { %v1531_v53 = vpop.eup %1530 }
 0x192   : > { %v1533_v54 = vpop.eup %1532  ;;  %v952_v55 = vadd.f32 1.0, %v1531_v53 }
 0x193   : > { %v958_v56 = vadd.f32 1.0, %v1533_v54  ;;  %v1535_v57 = vpop.eup %1534 }
 0x194   : > { %1538 = vrcp.f32 %v952_v55  ;;  %v1537_v58 = vpop.eup %1536  ;;  %v965_v63 = vadd.f32 1.0, %v1535_v57 }
 0x195   : > { %1540 = vrcp.f32 %v958_v56 }
 0x196   : > { %1542 = vrcp.f32 %v965_v63 }
 0x19e   : > { %v1539_v60 = vpop.eup %1538 }
 0x19f   : > { %v1541_v61 = vpop.eup %1540  ;;  %v969_v62 = vmul.f32 %v1539_v60, %v1537_v58 }
 0x1a0   : > { %v968_v0 = vmul.f32 %v1541_v61, %v373_v59  ;;  %v1543_v2 = vpop.eup %1542 }
 0x1a2   : > { %v970_v1 = vadd.f32 %v969_v62, %v968_v0 }
 0x1a4   : > { %1095 = vst [vmem:[#allocation12] sm:$0x1] %v970_v1  ;;  %1544 = vtanh.f32 %v970_v1 }
 0x1ae   : > { %v1545_v3 = vpop.eup %1544 }
 0x1af   : > { %v972_v4 = vmul.f32 %v1545_v3, %v1543_v2 }
 0x1b1   : > { %v973_v5 = vpack.c.bf16 %v972_v4, %v972_v4  ;;  %1094 = vst [vmem:[#allocation10] sm:$0x1] %v972_v4 }
 0x1b3   : > { %1343 = vmatmul.mubr.bf16.vlgmr.msra.gmra.mrb[8].mxu0 %v973_v5 }
 0x286   : > { %v1073_v7 = vpop.f32.mrb[8].mxu0 }
 0x287   : > { %v1996_v8 = vadd.f32 %v1073_v7, %v990_v6  ;;  %v1344_v9 = vpop.f32.mrb[9].mxu0 }
 0x288   : > { %v1076_v10 = vpop.f32.mrb[10].mxu0 }
 0x289   : > { %v1345_v11 = vpop.f32.mrb[11].mxu0  ;;  %v1080_v12 = vsel %vm1079_vm1, %v1996_v8, -inf }
 0x28a   : > { %1081 = vmax.xlane.f32.xlu0 %v1080_v12 }
 0x317   : > { %v1082_v13 = vpop.xlane.xlu0 %1081 }
 0x318   : > { %v1083_v14 = vsub.f32 %v1996_v8, %v1082_v13 }
 0x31a   : > { %v1084_v15 = vmul.f32 1.442695, %v1083_v14 }
 0x31c   : > { %1546 = vpow2.f32 %v1084_v15 }
 0x326   : > { %v1547_v16 = vpop.eup %1546 }
 0x327   : > { %v1086_v17 = vsel %vm1079_vm1, %v1547_v16, 0.0 }
 0x328   : > { %1087 = vadd.xlane.f32.xlu0 %v1086_v17 }
 0x329   : > { %1631 = shalt.err (!%p1628_p7)
}
 0x32a   : > { %s1632_s30 = scalar_lea.hbm %s2100_s9, 16  ;;  %p2123_p6 = pmov %p2122_p5 }
 0x32b   : > { %p1633_p10 = scmp.ne.s32.totalorder %s2100_s9, %s1632_s30  ;;  %p1638_p4 = scmp.lt.u32.totalorder %s1632_s30, %s2100_s9 }
 0x32d   : > { %p1634_p11 = pnand %p1633_p10, %p2123_p6 }
 0x32f   : > { %p1635_p0 = pneg %p1634_p11 }
 0x331   : > { %p1640_p1 = pnand %p1638_p4, %p1635_p0 }
 0x333   : > { %1643 = shalt.err (!%p1640_p1)
}
 0x334   : > { %p2124_p2 = pmov %p2122_p5  ;;  %s1757_s17 = smov [#allocation12]  }
 0x335   : > { %s1131_s15 = sshll.u32 %s1757_s17, 4  ;;  %s1132_s15 = int_to_ptr.vmem [resolvable:$true] %s1131_s15 }
 0x336   : > { %1356 = dma.vmem_to_hbm [thread:$0]  (%p2124_p2), %s1121_s12, 16, %s2100_s9, [#allocation11]  }
 0x337   : > { %s1644_s22 = scalar_lea.vmem %s1132_s15, 16  ;;  %p2125_p8 = pmov %p2124_p2 }
 0x338   : > { %p1645_p5 = scmp.ne.s32.totalorder %s1132_s15, %s1644_s22  ;;  %s1650_s24 = scalar_lea.vmem %s1132_s15, 32 }
 0x339   : > { %p1651_p13 = scmp.lt.s32.totalorder %s1132_s15, %s1132_s15  ;;  %p1652_p3 = scmp.lt.s32.totalorder %s1650_s24, %s1644_s22 }
 0x33a   : > { %p1646_p9 = pnand %p1645_p5, %p2125_p8 }
 0x33b   : > { %p1653_p7 = por %p1652_p3, %p1651_p13 }
 0x33c   : > { %p1647_p12 = pneg %p1646_p9 }
 0x33e   : > { %p1654_p10 = pnand %p1653_p7, %p1647_p12 }
 0x340   : > { %1657 = shalt.err (!%p1654_p10)
}
 0x341   : > { %s1658_s13 = scalar_lea.hbm %s2101_s10, 16  ;;  %p2126_p11 = pmov %p2124_p2 }
 0x342   : > { %p1659_p6 = scmp.ne.s32.totalorder %s2101_s10, %s1658_s13  ;;  %p1664_p1 = scmp.lt.u32.totalorder %s1658_s13, %s2101_s10 }
 0x344   : > { %p1660_p0 = pnand %p1659_p6, %p2126_p11 }
 0x346   : > { %p1661_p4 = pneg %p1660_p0 }
 0x348   : > { %p1666_p2 = pnand %p1664_p1, %p1661_p4 }
 0x34a   : > { %1669 = shalt.err (!%p1666_p2)
}
 0x34b   : > { %p2127_p5 = pmov %p2125_p8  ;;  %s1310_s17 = sshll.u32 %s1838_s21, 4 }
 0x34c   : > { %s1109_s22 = sshll.u32 %s1950_s16, 4  ;;  %s2042_s30 = scalar_lea.hbm %s2099_s8, %s1310_s17  ;;  %s2044_s22 = int_to_ptr.vmem [resolvable:$true] %s1109_s22 }
 0x34d   : > { %1358 = dma.vmem_to_hbm [thread:$0]  (%p2127_p5), %s1132_s15, 16, %s2101_s10, [#allocation11]  }
 0x34e   : > { %s1097_s15 = scalar_lea.sflag [#allocation6], %s351_s26  ;;  %s1670_s13 = scalar_lea.vmem %s2044_s22, 16 }
 0x34f   : > { %p1671_p8 = scmp.ne.s32.totalorder %s2044_s22, %s1670_s13  ;;  %p2128_p9 = scmp.ne.s32.totalorder %s2112_s27, 0 }
 0x350   : > { %s1758_s12 = smov [#allocation9]  }
 0x351   : > { %p1672_p12 = pnand %p1671_p8, %p2128_p9  ;;  %s1674_s11 = sshll.u32 %s1758_s12, 4  ;;  %s1675_s11 = int_to_ptr.vmem [resolvable:$false] %s1674_s11 }
 0x352   : > { %s1676_s19 = scalar_lea.vmem %s1675_s11, 32  ;;  %p1677_p3 = scmp.lt.s32.totalorder %s2044_s22, %s1675_s11 }
 0x353   : > { %p1673_p13 = pneg %p1672_p12  ;;  %p1678_p7 = scmp.lt.s32.totalorder %s1676_s19, %s1670_s13 }
 0x355   : > { %p1679_p10 = por %p1678_p7, %p1677_p3 }
 0x357   : > { %p1680_p6 = pnand %p1679_p10, %p1673_p13 }
 0x3b5   : > { %v1088_v18 = vpop.xlane.xlu0 %1087 }
 0x3b6   : > { %1548 = vlog2.f32 %v1088_v18 }
 0x3c0   : > { %v1549_v19 = vpop.eup %1548 }
 0x3c1   : > { %v1090_v20 = vmul.f32 0.6931472, %v1549_v19 }
 0x3c3   : > { %v1091_v21 = vadd.f32 %v1090_v20, %v1082_v13 }
 0x3c5   : > { %v1092_v22 = vsub.f32 %v1996_v8, %v1091_v21 }
 0x3c7   : > { %1093 = vst [vmem:[%s1950_s16] sm:$0x1] %v1092_v22 }
 0x3c8   : > { %1683 = shalt.err (!%p1680_p6)
}
 0x3c9   : > { %s1684_s26 = scalar_lea.hbm %s2042_s30, 16  ;;  %s1688_s29 = scalar_lea.hbm %s2099_s8, 128 }
 0x3ca   : > { %p1685_p11 = scmp.ne.s32.totalorder %s2042_s30, %s1684_s26  ;;  %p1689_p1 = scmp.lt.u32.totalorder %s2042_s30, %s2099_s8 }
 0x3cb   : > { %p1690_p2 = scmp.lt.u32.totalorder %s1688_s29, %s1684_s26  ;;  %p1692_p8 = scmp.lt.u32.totalorder %s1684_s26, %s2042_s30 }
 0x3cc   : > { %p1686_p0 = pnand %p1685_p11, %p2128_p9 }
 0x3cd   : > { %p1691_p5 = por %p1690_p2, %p1689_p1 }
 0x3ce   : > { %p1687_p4 = pneg %p1686_p0 }
 0x3cf   : > { %p1693_p12 = por %p1692_p8, %p1691_p5 }
 0x3d1   : > { %p1694_p13 = pnand %p1693_p12, %p1687_p4 }
 0x3d3   : > { %1697 = shalt.err (!%p1694_p13)
}
 0x3d4   : > { %1354 = dma.vmem_to_hbm [thread:$0]  (%p2128_p9), %s2044_s22, 16, %s2042_s30, %s1097_s15  }
 0x3d5   : > { %p2129_p3 = scmp.eq.s32.totalorder %s1838_s21, 7 }
 0x3d7   : > { %1725 = dma.done.wait (%p2129_p3), [#allocation11], 32   ;;  %p2130_p7 = pmov %p2129_p3 }
 0x3d9   : > { %1727 = vsyncadd (%p2130_p7), [#allocation11], 4294967264 }
 0x3da PF: > { %p1383_p10 = scmp.ge.s32.totalorder %s1746_s20, 2  ;;  %s1151_s24 = sand.u32 1, %s1734_s18  }
 0x3db   : > { %p2131_p6 = scmp.ne.s32.totalorder %s2113_s28, 0  ;;  %s1152_s25 = scalar_lea.sflag [#allocation6], %s1151_s24 }
 0x3dd   : > { %p1372_p11 = pnand %p1383_p10, %p2131_p6 }
 0x3df   : > { %1729 = dma.done.wait (!%p1372_p11), %s1152_s25, 16  }
 0x3e0   : > { %1731 = vsyncadd (!%p1372_p11), %s1152_s25, 4294967280  ;;  %s2132_s20 = sld [smem:[#allocation19_spill]]  ;;  %s2133_s27 = sld [smem:[#allocation18_spill]] }
 0x3e1   : > { %s2134_s19 = sld [smem:[#allocation20_spill]]  ;;  %s2135_s18 = smov %s1738_s0 }
 0x3e6   : > { %p30_p9 = scmp.ge.s32.totalorder %s2132_s20, 10   ;;  %s2136_s0 = smov %s2133_s27 }
 0x3e8   :  { %32 = sbr.rel (!%p30_p9) target bundleno = 21 (0x15), region = 112 }
 0x3ef   :  { %1156 = vsyncpa [#allocation5], 1 }
 0x3f0   :  { %1158 = vsyncpa [#allocation5 + $0x1], 1 }
 0x3f1   :  { %1159 = vsyncpa [#allocation8], 1 }
 0x3f2   :  { %1160 = vsyncpa [#allocation6], 1 }
 0x3f3   :  { %1162 = vsyncpa [#allocation6 + $0x1], 1 }
 0x3f4   :  { %1163 = vsyncpa [#allocation11], 1 }

</bundles_post_ra>
